<compile_context>
chip_gen: v5e
topology: v5e:2x2
jax: 0.10.0
libtpu: 0.0.40
codegen_flags: <defaults>
</compile_context>

<pallas_src>
import functools
import math

import jax
import jax.numpy as jnp
from jax.experimental import pallas as pl
from jax.experimental.pallas import tpu as pltpu


def _round_up(a, b):
    return ((a + b - 1) // b) * b


def _sc_triplet_kernel(x_ref, c_ref, inv_ref, tgt_ref, o_ref, *,
                       K, tc, la, gamma_mul, margin):
    j = pl.program_id(1)                       # class-tile index
    tb = x_ref.shape[0]

    # One fused, lane-dense MXU dot: (TB, nOut) x (nOut, K*TC) -> (TB, K*TC).
    sims = jnp.dot(x_ref[...], c_ref[0], preferred_element_type=jnp.float32)
    # Post-matmul center normalization (per-column 1/||w||, kept in f32).
    sims = sims * inv_ref[0]                   # (TB, K*TC) * (1, K*TC)

    # Softmax over the K sub-centers of gamma_mul * sims, then the weighted
    # sum (simClass).  `sims` stays a single fused tile; all K slices are
    # static and 128-aligned on the lane axis.  Max-stabilization is kept
    # (inputs are not guaranteed bounded).
    m = sims[:, 0:tc]
    for k in range(1, K):
        m = jnp.maximum(m, sims[:, k * tc:(k + 1) * tc])
    numer = jnp.zeros_like(m)
    denom = jnp.zeros_like(m)
    for k in range(K):
        s_k = sims[:, k * tc:(k + 1) * tc]
        e = jnp.exp(gamma_mul * (s_k - m))     # EUP
        denom = denom + e
        numer = numer + e * s_k
    # EUP reciprocal keeps the divide off the VALU slot.
    sim_class = numer * pl.reciprocal(denom, approx=True)     # (TB, TC)

    # Margin at the target class via iota == target (no dense one-hot input).
    col = jax.lax.broadcasted_iota(jnp.int32, (tb, tc), 1) + j * tc
    is_tgt = (col == tgt_ref[...]).astype(jnp.float32)         # (TB, TC)

    o_ref[...] = (la * (sim_class - margin * is_tgt)).astype(o_ref.dtype)


def sc_triplet_forward(x, fc, target, *, n_classes, K,
                       la=20.0, gamma=0.1, margin=0.01,
                       block_b=None, block_c=128, dot_dtype=jnp.bfloat16):
    """Forward pass of LossFunction. Returns (loss, logits, prec1, eer)."""
    B, n_out = x.shape
    cN = n_classes
    assert fc.shape == (n_out, cN * K)
    tc = int(block_c)
    assert tc % 128 == 0, "class block must be lane-dense (multiple of 128)"

    # ---- tiling / padding ------------------------------------------------
    cN_pad = _round_up(cN, tc)
    n_ct = cN_pad // tc
    tb = int(block_b) if block_b is not None else min(128, _round_up(B, 8))
    B_pad = _round_up(B, tb)
    n_bt = B_pad // tb

    # ---- glue: re-layout RAW centers to (n_ct, nOut, K*TC), k-major chunks -
    # original fc column index = class*K + k  (fc.reshape(nOut, cN, K)).
    fc32 = fc.astype(jnp.float32)
    fc3 = jnp.pad(fc32.reshape(n_out, cN, K), ((0, 0), (0, cN_pad - cN), (0, 0)))
    centers = (fc3.reshape(n_out, n_ct, tc, K)
               .transpose(1, 0, 3, 2)                # (n_ct, nOut, K, TC)
               .reshape(n_ct, n_out, K * tc)
               .astype(dot_dtype))

    # inverse column L2 norms, matching layout; padded classes get 0.
    col_norm = jnp.sqrt(jnp.sum(fc32 * fc32, axis=0))          # (cN*K,)
    inv = jnp.where(col_norm > 0, 1.0 / col_norm, 0.0)
    inv_r = (jnp.pad(inv.reshape(cN, K), ((0, cN_pad - cN), (0, 0)))
             .reshape(n_ct, tc, K)
             .transpose(0, 2, 1)                     # (n_ct, K, TC)
             .reshape(n_ct, 1, K * tc)
             .astype(jnp.float32))

    x_p = jnp.pad(x.astype(jnp.float32), ((0, B_pad - B), (0, 0))).astype(dot_dtype)
    tgt_p = jnp.pad(target.astype(jnp.int32), (0, B_pad - B)).reshape(B_pad, 1)

    kernel = functools.partial(
        _sc_triplet_kernel,
        K=K, tc=tc, la=float(la), gamma_mul=1.0 / float(gamma),
        margin=float(margin))

    bytes_accessed = int(
        x_p.size * x_p.dtype.itemsize
        + centers.size * centers.dtype.itemsize
        + inv_r.size * inv_r.dtype.itemsize
        + tgt_p.size * tgt_p.dtype.itemsize
        + B_pad * cN_pad * 4)

    logits_pad = pl.pallas_call(
        kernel,
        out_shape=jax.ShapeDtypeStruct((B_pad, cN_pad), jnp.float32),
        grid=(n_bt, n_ct),
        in_specs=[
            pl.BlockSpec((tb, n_out), lambda i, j: (i, 0)),            # x
            pl.BlockSpec((1, n_out, K * tc), lambda i, j: (j, 0, 0)),  # centers
            pl.BlockSpec((1, 1, K * tc), lambda i, j: (j, 0, 0)),      # 1/||w||
            pl.BlockSpec((tb, 1), lambda i, j: (i, 0)),                # targets
        ],
        out_specs=pl.BlockSpec((tb, tc), lambda i, j: (i, j)),         # logits
        compiler_params=pltpu.CompilerParams(
            dimension_semantics=("parallel", "parallel")),
        cost_estimate=pl.CostEstimate(
            flops=int(2 * B_pad * n_out * K * cN_pad),
            transcendentals=int(B_pad * K * cN_pad),
            bytes_accessed=bytes_accessed),
    )(x_p, centers, inv_r, tgt_p)

    # ---- glue: slice away padding, mean CE, top-1 accuracy ----------------
    logits = logits_pad[:B, :cN]
    log_probs = jax.nn.log_softmax(logits, axis=1)
    loss = -jnp.mean(jnp.take_along_axis(log_probs,
                                         target.astype(jnp.int32)[:, None],
                                         axis=1))
    prec1 = 100.0 * jnp.mean((jnp.argmax(logits, axis=1) == target)
                             .astype(jnp.float32))
    # TODO(synk): `equal_error_rate` is an external, undefined helper in the
    # reference module; returning a placeholder instead of faking its math.
    eer = jnp.float32(0.0)
    return loss, logits, prec1, eer


def _reference_forward(x, fc, target, *, n_classes, K,
                       la=20.0, gamma=0.1, margin=0.01,
                       dot_dtype=jnp.float32):
    """Pure-JAX reference mirroring the PyTorch math (optionally with the
    same low-precision matmul inputs as the kernel)."""
    inv_norm = 1.0 / jnp.linalg.norm(fc.astype(jnp.float32), axis=0,
                                     keepdims=True)
    xq = x.astype(dot_dtype).astype(jnp.float32)
    fq = fc.astype(dot_dtype).astype(jnp.float32)
    sim_ind = (xq @ fq) * inv_norm                            # (B, cN*K)
    sim_struc = sim_ind.reshape(-1, n_classes, K)
    prob = jax.nn.softmax(sim_struc * (1.0 / gamma), axis=2)
    sim_class = jnp.sum(prob * sim_struc, axis=2)             # (B, cN)
    margin_m = jax.nn.one_hot(target, n_classes, dtype=jnp.float32) * margin
    logits = la * (sim_class - margin_m)
    log_probs = jax.nn.log_softmax(logits, axis=1)
    loss = -jnp.mean(jnp.take_along_axis(log_probs, target[:, None], axis=1))
    return loss, logits


if __name__ == "__main__":
    # small shapes consistent with the module
    B, n_out, n_classes, K = 8, 32, 16, 10
    la, gamma, margin = 20.0, 0.1, 0.01

    key = jax.random.PRNGKey(0)
    kx, kf, kt = jax.random.split(key, 3)

    x = jax.random.normal(kx, (B, n_out), dtype=jnp.float32)

    # deterministic kaiming_uniform_(a=sqrt(5)) init for fc of shape (nOut, cN*K)
    fan_in = n_classes * K                                    # PyTorch: size(1)
    gain = math.sqrt(2.0 / (1.0 + 5.0))
    bound = math.sqrt(3.0) * gain / math.sqrt(fan_in)
    fc = jax.random.uniform(kf, (n_out, n_classes * K),
                            minval=-bound, maxval=bound, dtype=jnp.float32)

    target = jax.random.randint(kt, (B,), 0, n_classes, dtype=jnp.int32)

    # --- f32 matmul path: check against the faithful f32 reference ---------
    ref_loss, ref_logits = _reference_forward(
        x, fc, target, n_classes=n_classes, K=K,
        la=la, gamma=gamma, margin=margin, dot_dtype=jnp.float32)
    loss32, logits32, prec1, eer = sc_triplet_forward(
        x, fc, target, n_classes=n_classes, K=K,
        la=la, gamma=gamma, margin=margin, dot_dtype=jnp.float32)
    jax.block_until_ready((loss32, logits32, prec1, eer))
    assert jnp.allclose(logits32, ref_logits, atol=1e-1, rtol=1e-2), \
        "logits mismatch (f32)"
    assert jnp.allclose(loss32, ref_loss, atol=5e-2, rtol=1e-2), \
        "loss mismatch (f32)"

    # --- bf16 matmul path (default): check against a bf16-quantized ref ----
    ref_loss16, ref_logits16 = _reference_forward(
        x, fc, target, n_classes=n_classes, K=K,
        la=la, gamma=gamma, margin=margin, dot_dtype=jnp.bfloat16)
    loss16, logits16, prec1_16, _ = sc_triplet_forward(
        x, fc, target, n_classes=n_classes, K=K,
        la=la, gamma=gamma, margin=margin, dot_dtype=jnp.bfloat16)
    jax.block_until_ready((loss16, logits16, prec1_16))
    assert jnp.allclose(logits16, ref_logits16, atol=2e-1, rtol=2e-2), \
        "logits mismatch (bf16)"
    assert jnp.allclose(loss16, ref_loss16, atol=1e-1, rtol=2e-2), \
        "loss mismatch (bf16)"

    print("KERNEL_OK")
</pallas_src>

<mosaic_0001>
module attributes {stable_mosaic.version = 11 : i64} {
  func.func @_sc_triplet_kernel(%arg0: i32, %arg1: i32, %arg2: memref<8x32xf32, #tpu.memory_space<vmem>>, %arg3: memref<1x32x1280xf32, #tpu.memory_space<vmem>>, %arg4: memref<1x1x1280xf32, #tpu.memory_space<vmem>>, %arg5: memref<8x1xi32, #tpu.memory_space<vmem>>, %arg6: memref<8x128xf32, #tpu.memory_space<vmem>>) attributes {dimension_semantics = [#tpu.dimension_semantics<parallel>, #tpu.dimension_semantics<parallel>], iteration_bounds = array<i64: 1, 1>, scalar_prefetch = 0 : i64, scratch_operands = 0 : i64, tpu.core_type = #tpu.core_type<tc>, window_params = [{transform_indices = @transform_0, window_bounds = array<i64: 8, 32>}, {transform_indices = @transform_1, window_bounds = array<i64: 1, 32, 1280>}, {transform_indices = @transform_2, window_bounds = array<i64: 1, 1, 1280>}, {transform_indices = @transform_3, window_bounds = array<i64: 8, 1>}, {transform_indices = @transform_4, window_bounds = array<i64: 8, 128>}]} {
    %c0 = arith.constant 0 : index
    %c0_0 = arith.constant 0 : index
    %0 = vector.load %arg2[%c0, %c0_0] : memref<8x32xf32, #tpu.memory_space<vmem>>, vector<8x32xf32>
    %c0_1 = arith.constant 0 : index
    %c0_2 = arith.constant 0 : index
    %c0_3 = arith.constant 0 : index
    %1 = vector.load %arg3[%c0_1, %c0_2, %c0_3] : memref<1x32x1280xf32, #tpu.memory_space<vmem>>, vector<1x32x1280xf32>
    %2 = vector.shape_cast %1 : vector<1x32x1280xf32> to vector<32x1280xf32>
    %cst = arith.constant dense<0.000000e+00> : vector<8x1280xf32>
    %3 = tpu.matmul %0, %2, %cst {dimension_numbers = #tpu.dot_dimension_numbers<[1], [0], [0], [1], [0, 0, 1, 1], [], []>} : vector<8x32xf32>, vector<32x1280xf32>, vector<8x1280xf32> -> vector<8x1280xf32>
    %c0_4 = arith.constant 0 : index
    %c0_5 = arith.constant 0 : index
    %c0_6 = arith.constant 0 : index
    %4 = vector.load %arg4[%c0_4, %c0_5, %c0_6] : memref<1x1x1280xf32, #tpu.memory_space<vmem>>, vector<1x1x1280xf32>
    %5 = vector.shape_cast %4 : vector<1x1x1280xf32> to vector<1x1280xf32>
    %6 = vector.broadcast %5 : vector<1x1280xf32> to vector<8x1280xf32>
    %7 = arith.mulf %3, %6 : vector<8x1280xf32>
    %8 = vector.extract_strided_slice %7 {offsets = [0, 0], sizes = [8, 128], strides = [1, 1]} : vector<8x1280xf32> to vector<8x128xf32>
    %9 = vector.extract_strided_slice %7 {offsets = [0, 128], sizes = [8, 128], strides = [1, 1]} : vector<8x1280xf32> to vector<8x128xf32>
    %10 = arith.maximumf %8, %9 : vector<8x128xf32>
    %11 = vector.extract_strided_slice %7 {offsets = [0, 256], sizes = [8, 128], strides = [1, 1]} : vector<8x1280xf32> to vector<8x128xf32>
    %12 = arith.maximumf %10, %11 : vector<8x128xf32>
    %13 = vector.extract_strided_slice %7 {offsets = [0, 384], sizes = [8, 128], strides = [1, 1]} : vector<8x1280xf32> to vector<8x128xf32>
    %14 = arith.maximumf %12, %13 : vector<8x128xf32>
    %15 = vector.extract_strided_slice %7 {offsets = [0, 512], sizes = [8, 128], strides = [1, 1]} : vector<8x1280xf32> to vector<8x128xf32>
    %16 = arith.maximumf %14, %15 : vector<8x128xf32>
    %17 = vector.extract_strided_slice %7 {offsets = [0, 640], sizes = [8, 128], strides = [1, 1]} : vector<8x1280xf32> to vector<8x128xf32>
    %18 = arith.maximumf %16, %17 : vector<8x128xf32>
    %19 = vector.extract_strided_slice %7 {offsets = [0, 768], sizes = [8, 128], strides = [1, 1]} : vector<8x1280xf32> to vector<8x128xf32>
    %20 = arith.maximumf %18, %19 : vector<8x128xf32>
    %21 = vector.extract_strided_slice %7 {offsets = [0, 896], sizes = [8, 128], strides = [1, 1]} : vector<8x1280xf32> to vector<8x128xf32>
    %22 = arith.maximumf %20, %21 : vector<8x128xf32>
    %23 = vector.extract_strided_slice %7 {offsets = [0, 1024], sizes = [8, 128], strides = [1, 1]} : vector<8x1280xf32> to vector<8x128xf32>
    %24 = arith.maximumf %22, %23 : vector<8x128xf32>
    %25 = vector.extract_strided_slice %7 {offsets = [0, 1152], sizes = [8, 128], strides = [1, 1]} : vector<8x1280xf32> to vector<8x128xf32>
    %26 = arith.maximumf %24, %25 : vector<8x128xf32>
    %cst_7 = arith.constant 0.000000e+00 : f32
    %27 = vector.broadcast %cst_7 : f32 to vector<8x128xf32>
    %cst_8 = arith.constant 0.000000e+00 : f32
    %28 = vector.broadcast %cst_8 : f32 to vector<8x128xf32>
    %29 = vector.extract_strided_slice %7 {offsets = [0, 0], sizes = [8, 128], strides = [1, 1]} : vector<8x1280xf32> to vector<8x128xf32>
    %30 = arith.subf %29, %26 : vector<8x128xf32>
    %cst_9 = arith.constant 1.000000e+01 : f32
    %31 = vector.broadcast %cst_9 : f32 to vector<8x128xf32>
    %32 = arith.mulf %31, %30 : vector<8x128xf32>
    %33 = math.exp %32 : vector<8x128xf32>
    %34 = arith.addf %28, %33 : vector<8x128xf32>
    %35 = arith.mulf %33, %29 : vector<8x128xf32>
    %36 = arith.addf %27, %35 : vector<8x128xf32>
    %37 = vector.extract_strided_slice %7 {offsets = [0, 128], sizes = [8, 128], strides = [1, 1]} : vector<8x1280xf32> to vector<8x128xf32>
    %38 = arith.subf %37, %26 : vector<8x128xf32>
    %cst_10 = arith.constant 1.000000e+01 : f32
    %39 = vector.broadcast %cst_10 : f32 to vector<8x128xf32>
    %40 = arith.mulf %39, %38 : vector<8x128xf32>
    %41 = math.exp %40 : vector<8x128xf32>
    %42 = arith.addf %34, %41 : vector<8x128xf32>
    %43 = arith.mulf %41, %37 : vector<8x128xf32>
    %44 = arith.addf %36, %43 : vector<8x128xf32>
    %45 = vector.extract_strided_slice %7 {offsets = [0, 256], sizes = [8, 128], strides = [1, 1]} : vector<8x1280xf32> to vector<8x128xf32>
    %46 = arith.subf %45, %26 : vector<8x128xf32>
    %cst_11 = arith.constant 1.000000e+01 : f32
    %47 = vector.broadcast %cst_11 : f32 to vector<8x128xf32>
    %48 = arith.mulf %47, %46 : vector<8x128xf32>
    %49 = math.exp %48 : vector<8x128xf32>
    %50 = arith.addf %42, %49 : vector<8x128xf32>
    %51 = arith.mulf %49, %45 : vector<8x128xf32>
    %52 = arith.addf %44, %51 : vector<8x128xf32>
    %53 = vector.extract_strided_slice %7 {offsets = [0, 384], sizes = [8, 128], strides = [1, 1]} : vector<8x1280xf32> to vector<8x128xf32>
    %54 = arith.subf %53, %26 : vector<8x128xf32>
    %cst_12 = arith.constant 1.000000e+01 : f32
    %55 = vector.broadcast %cst_12 : f32 to vector<8x128xf32>
    %56 = arith.mulf %55, %54 : vector<8x128xf32>
    %57 = math.exp %56 : vector<8x128xf32>
    %58 = arith.addf %50, %57 : vector<8x128xf32>
    %59 = arith.mulf %57, %53 : vector<8x128xf32>
    %60 = arith.addf %52, %59 : vector<8x128xf32>
    %61 = vector.extract_strided_slice %7 {offsets = [0, 512], sizes = [8, 128], strides = [1, 1]} : vector<8x1280xf32> to vector<8x128xf32>
    %62 = arith.subf %61, %26 : vector<8x128xf32>
    %cst_13 = arith.constant 1.000000e+01 : f32
    %63 = vector.broadcast %cst_13 : f32 to vector<8x128xf32>
    %64 = arith.mulf %63, %62 : vector<8x128xf32>
    %65 = math.exp %64 : vector<8x128xf32>
    %66 = arith.addf %58, %65 : vector<8x128xf32>
    %67 = arith.mulf %65, %61 : vector<8x128xf32>
    %68 = arith.addf %60, %67 : vector<8x128xf32>
    %69 = vector.extract_strided_slice %7 {offsets = [0, 640], sizes = [8, 128], strides = [1, 1]} : vector<8x1280xf32> to vector<8x128xf32>
    %70 = arith.subf %69, %26 : vector<8x128xf32>
    %cst_14 = arith.constant 1.000000e+01 : f32
    %71 = vector.broadcast %cst_14 : f32 to vector<8x128xf32>
    %72 = arith.mulf %71, %70 : vector<8x128xf32>
    %73 = math.exp %72 : vector<8x128xf32>
    %74 = arith.addf %66, %73 : vector<8x128xf32>
    %75 = arith.mulf %73, %69 : vector<8x128xf32>
    %76 = arith.addf %68, %75 : vector<8x128xf32>
    %77 = vector.extract_strided_slice %7 {offsets = [0, 768], sizes = [8, 128], strides = [1, 1]} : vector<8x1280xf32> to vector<8x128xf32>
    %78 = arith.subf %77, %26 : vector<8x128xf32>
    %cst_15 = arith.constant 1.000000e+01 : f32
    %79 = vector.broadcast %cst_15 : f32 to vector<8x128xf32>
    %80 = arith.mulf %79, %78 : vector<8x128xf32>
    %81 = math.exp %80 : vector<8x128xf32>
    %82 = arith.addf %74, %81 : vector<8x128xf32>
    %83 = arith.mulf %81, %77 : vector<8x128xf32>
    %84 = arith.addf %76, %83 : vector<8x128xf32>
    %85 = vector.extract_strided_slice %7 {offsets = [0, 896], sizes = [8, 128], strides = [1, 1]} : vector<8x1280xf32> to vector<8x128xf32>
    %86 = arith.subf %85, %26 : vector<8x128xf32>
    %cst_16 = arith.constant 1.000000e+01 : f32
    %87 = vector.broadcast %cst_16 : f32 to vector<8x128xf32>
    %88 = arith.mulf %87, %86 : vector<8x128xf32>
    %89 = math.exp %88 : vector<8x128xf32>
    %90 = arith.addf %82, %89 : vector<8x128xf32>
    %91 = arith.mulf %89, %85 : vector<8x128xf32>
    %92 = arith.addf %84, %91 : vector<8x128xf32>
    %93 = vector.extract_strided_slice %7 {offsets = [0, 1024], sizes = [8, 128], strides = [1, 1]} : vector<8x1280xf32> to vector<8x128xf32>
    %94 = arith.subf %93, %26 : vector<8x128xf32>
    %cst_17 = arith.constant 1.000000e+01 : f32
    %95 = vector.broadcast %cst_17 : f32 to vector<8x128xf32>
    %96 = arith.mulf %95, %94 : vector<8x128xf32>
    %97 = math.exp %96 : vector<8x128xf32>
    %98 = arith.addf %90, %97 : vector<8x128xf32>
    %99 = arith.mulf %97, %93 : vector<8x128xf32>
    %100 = arith.addf %92, %99 : vector<8x128xf32>
    %101 = vector.extract_strided_slice %7 {offsets = [0, 1152], sizes = [8, 128], strides = [1, 1]} : vector<8x1280xf32> to vector<8x128xf32>
    %102 = arith.subf %101, %26 : vector<8x128xf32>
    %cst_18 = arith.constant 1.000000e+01 : f32
    %103 = vector.broadcast %cst_18 : f32 to vector<8x128xf32>
    %104 = arith.mulf %103, %102 : vector<8x128xf32>
    %105 = math.exp %104 : vector<8x128xf32>
    %106 = arith.addf %98, %105 : vector<8x128xf32>
    %107 = arith.mulf %105, %101 : vector<8x128xf32>
    %108 = arith.addf %100, %107 : vector<8x128xf32>
    %109 = tpu.reciprocal %106 {approx = true} : vector<8x128xf32> -> vector<8x128xf32>
    %110 = arith.mulf %108, %109 : vector<8x128xf32>
    %111 = tpu.iota {dimensions = array<i32: 1>} : vector<8x128xi32>
    %c128_i32 = arith.constant 128 : i32
    %112 = arith.muli %arg1, %c128_i32 : i32
    %113 = vector.broadcast %112 : i32 to vector<8x128xi32>
    %114 = arith.addi %111, %113 : vector<8x128xi32>
    %c0_19 = arith.constant 0 : index
    %c0_20 = arith.constant 0 : index
    %115 = vector.load %arg5[%c0_19, %c0_20] : memref<8x1xi32, #tpu.memory_space<vmem>>, vector<8x1xi32>
    %116 = vector.broadcast %115 : vector<8x1xi32> to vector<8x128xi32>
    %117 = arith.cmpi eq, %114, %116 : vector<8x128xi32>
    %118 = arith.extui %117 : vector<8x128xi1> to vector<8x128xi32>
    %119 = arith.sitofp %118 : vector<8x128xi32> to vector<8x128xf32>
    %cst_21 = arith.constant 0.00999999977 : f32
    %120 = vector.broadcast %cst_21 : f32 to vector<8x128xf32>
    %121 = arith.mulf %120, %119 : vector<8x128xf32>
    %122 = arith.subf %110, %121 : vector<8x128xf32>
    %cst_22 = arith.constant 2.000000e+01 : f32
    %123 = vector.broadcast %cst_22 : f32 to vector<8x128xf32>
    %124 = arith.mulf %123, %122 : vector<8x128xf32>
    %c0_23 = arith.constant 0 : index
    %c0_24 = arith.constant 0 : index
    %125 = vector.load %arg6[%c0_23, %c0_24] : memref<8x128xf32, #tpu.memory_space<vmem>>, vector<8x128xf32>
    tpu.vector_store %arg6[%c0_23, %c0_24], %124 {strides = array<i32>} : memref<8x128xf32, #tpu.memory_space<vmem>>, vector<8x128xf32>,
    return
  }
  func.func @transform_0(%arg0: i32, %arg1: i32) -> (i32, i32) {
    %c0_i32 = arith.constant 0 : i32
    %c0_i32_0 = arith.constant 0 : i32
    return %arg0, %c0_i32 : i32, i32
  }
  func.func @transform_1(%arg0: i32, %arg1: i32) -> (i32, i32, i32) {
    %c0_i32 = arith.constant 0 : i32
    %c0_i32_0 = arith.constant 0 : i32
    %c0_i32_1 = arith.constant 0 : i32
    return %arg1, %c0_i32, %c0_i32_0 : i32, i32, i32
  }
  func.func @transform_2(%arg0: i32, %arg1: i32) -> (i32, i32, i32) {
    %c0_i32 = arith.constant 0 : i32
    %c0_i32_0 = arith.constant 0 : i32
    %c0_i32_1 = arith.constant 0 : i32
    return %arg1, %c0_i32, %c0_i32_0 : i32, i32, i32
  }
  func.func @transform_3(%arg0: i32, %arg1: i32) -> (i32, i32) {
    %c0_i32 = arith.constant 0 : i32
    %c0_i32_0 = arith.constant 0 : i32
    return %arg0, %c0_i32 : i32, i32
  }
  func.func @transform_4(%arg0: i32, %arg1: i32) -> (i32, i32) {
    %c0_i32 = arith.constant 0 : i32
    return %arg0, %arg1 : i32, i32
  }
}

</mosaic_0001>

<bundles_post_ra>
// kernel: tpu_custom_call.1
= control target key start
LH: loop header
LB: loop body
LE: loop exit
PB: predicated region body
PF: predicated region fallthrough
CT: control target
= control target key end

     0   :  { %9 = vsyncpa [#allocation3], 0  ;;  %s683_s0 = inlined_call_operand.hbm [shape: f32[8,32], index: 0, kind: input, shape index: {}]   ;;  %s684_s1 = inlined_call_operand.hbm [shape: f32[1,32,1280], index: 1, kind: input, shape index: {}]   ;;  %s685_s2 = inlined_call_operand.vmem [shape: f32[1,1,1280], index: 2, kind: input, shape index: {}]   ;;  %s686_s3 = inlined_call_operand.vmem [shape: s32[8,1], index: 3, kind: input, shape index: {}]   ;;  %s687_s4 = inlined_call_operand.hbm [shape: f32[8,128], index: 4, kind: output, shape index: {}]  }
   0x1   :  { %10 = vsyncpa [#allocation6], 0 }
   0x2   :  { %11 = vsyncpa [#allocation4], 0  ;;  %s17_s17 = sshll.u32 %s683_s0, 4  ;;  %s561_s18 = smov [#allocation2]   ;;  %s18_s17 = int_to_ptr.hbm [resolvable:$true] %s17_s17 }
   0x3   :  { %s19_s19 = sshll.u32 %s561_s18, 4  ;;  %s27_s22 = sshll.u32 %s684_s1, 4  ;;  %s20_s19 = int_to_ptr.vmem [resolvable:$true] %s19_s19  ;;  %s28_s22 = int_to_ptr.hbm [resolvable:$true] %s27_s22 }
   0x4   :  { %22 = dma.hbm_to_vmem [thread:$0]  %s18_s17, 128, %s20_s19, [#allocation3]  }
   0x5   :  { %s562_s23 = smov [#allocation5]   ;;  %s563_s25 = smov 1280  }
   0x6   :  { %s29_s24 = sshll.u32 %s562_s23, 4  ;;  %s564_s26 = smov 80   ;;  %s30_s24 = int_to_ptr.vmem [resolvable:$true] %s29_s24 }
   0x7   :  { %35 = dma.hbm_to_vmem [thread:$0]  %s28_s22, 5120, %s30_s24, [#allocation6], %s563_s25, %s563_s25, %s564_s26  }
   0x8   :  { %555 = dma.done.wait [#allocation3], 128  }
   0x9   :  { %556 = vsyncadd [#allocation3], 4294967168 }
   0xa   :  { %557 = dma.done.wait [#allocation6], 5120  }
   0xb   :  { %558 = vsyncadd [#allocation6], 4294962176  ;;  %v565_v0 = vmov 0   ;;  %v81_v1 = vld [vmem:[#allocation5 + $0x100] sm:$0xff]  ;;  %v79_v2 = vld [vmem:[#allocation5 + $0xf0] sm:$0xff]  ;;  %vm89_vm0 = vcmask 261120  }
   0xc   :  { %460 = vset.pattern.permute.xlu0 %v565_v0  ;;  %v80_v3 = vld [vmem:[#allocation5 + $0xf8] sm:$0xff]  ;;  %145 = vmatpush.msra.mxu2 %v81_v1  ;;  %v71_v4 = vld [vmem:[#allocation5 + $0xb0] sm:$0xff]  ;;  %v82_v5 = vld [vmem:[#allocation5 + $0x108] sm:$0xff]  ;;  %s431_s7 = sshll.u32 %s687_s4, 4  ;;  %s432_s7 = int_to_ptr.hbm [resolvable:$true] %s431_s7 }
   0xd   :  { %105 = vmatpush.msra.mxu0 %v79_v2  ;;  %v69_v6 = vld [vmem:[#allocation5 + $0xa0] sm:$0xff]  ;;  %125 = vmatpush.msra.mxu1 %v80_v3  ;;  %v70_v7 = vld [vmem:[#allocation5 + $0xa8] sm:$0xff]  ;;  %v72_v9 = vld [vmem:[#allocation5 + $0xb8] sm:$0xff] }
   0xe   :  { %165 = vmatpush.msra.mxu3 %v82_v5  ;;  %v61_v8 = vld [vmem:[#allocation5 + $0x60] sm:$0xff]  ;;  %146 = vmatpush.msra.mxu2 %v71_v4  ;;  %v59_v10 = vld [vmem:[#allocation5 + $0x50] sm:$0xff]  ;;  %v60_v11 = vld [vmem:[#allocation5 + $0x58] sm:$0xff] }
   0xf   :  { %106 = vmatpush.msra.mxu0 %v69_v6  ;;  %126 = vmatpush.msra.mxu1 %v70_v7  ;;  %v51_v12 = vld [vmem:[#allocation5 + $0x10] sm:$0xff]  ;;  %v62_v13 = vld [vmem:[#allocation5 + $0x68] sm:$0xff]  ;;  %v599_v14 = vld [vmem:[#allocation2] sm:$0xff] }
  0x10   :  { %166 = vmatpush.msra.mxu3 %v72_v9  ;;  %147 = vmatpush.msra.mxu2 %v61_v8  ;;  %v49_v15 = vld [vmem:[#allocation5] sm:$0xff]  ;;  %v50_v16 = vld [vmem:[#allocation5 + $0x8] sm:$0xff]  ;;  %v52_v18 = vld [vmem:[#allocation5 + $0x18] sm:$0xff] }
  0x11   :  { %107 = vmatpush.msra.mxu0 %v59_v10  ;;  %127 = vmatpush.msra.mxu1 %v60_v11  ;;  %v85_v17 = vld [vmem:[#allocation5 + $0x120] sm:$0xff]  ;;  %v83_v19 = vld [vmem:[#allocation5 + $0x110] sm:$0xff]  ;;  %v86_v21 = vld [vmem:[#allocation5 + $0x128] sm:$0xff] }
  0x12   :  { %167 = vmatpush.msra.mxu3 %v62_v13  ;;  %148 = vmatpush.msra.mxu2 %v51_v12  ;;  %v75_v20 = vld [vmem:[#allocation5 + $0xd0] sm:$0xff]  ;;  %v73_v22 = vld [vmem:[#allocation5 + $0xc0] sm:$0xff]  ;;  %v84_v23 = vld [vmem:[#allocation5 + $0x118] sm:$0xff] }
  0x13   :  { %108 = vmatpush.msra.mxu0 %v49_v15  ;;  %444 = vmatmul.msk.f32.vlgmr.msra.gmra.mxu2 %vm89_vm0, %v599_v14  ;;  %v65_v24 = vld [vmem:[#allocation5 + $0x80] sm:$0xff]  ;;  %v76_v25 = vld [vmem:[#allocation5 + $0xd8] sm:$0xff]  ;;  %v63_v26 = vld [vmem:[#allocation5 + $0x70] sm:$0xff] }
  0x14   :  { %128 = vmatpush.msra.mxu1 %v50_v16  ;;  %225 = vmatpush.msrb.mxu2 %v85_v17  ;;  %v74_v27 = vld [vmem:[#allocation5 + $0xc8] sm:$0xff]  ;;  %v55_v28 = vld [vmem:[#allocation5 + $0x30] sm:$0xff]  ;;  %v53_v30 = vld [vmem:[#allocation5 + $0x20] sm:$0xff] }
  0x15   :  { %168 = vmatpush.msra.mxu3 %v52_v18  ;;  %442 = vmatmul.msk.f32.vlgmr.msra.gmra.mxu0 %vm89_vm0, %v599_v14  ;;  %v66_v29 = vld [vmem:[#allocation5 + $0x88] sm:$0xff]  ;;  %v64_v31 = vld [vmem:[#allocation5 + $0x78] sm:$0xff]  ;;  %v87_v34 = vld [vmem:[#allocation5 + $0x130] sm:$0xff] }
  0x16   :  { %443 = vmatmul.msk.f32.vlgmr.msra.gmra.mxu1 %vm89_vm0, %v599_v14  ;;  %445 = vmatmul.msk.f32.vlgmr.msra.gmra.mxu3 %vm89_vm0, %v599_v14  ;;  %v56_v32 = vld [vmem:[#allocation5 + $0x38] sm:$0xff]  ;;  %v54_v33 = vld [vmem:[#allocation5 + $0x28] sm:$0xff]  ;;  %v77_v36 = vld [vmem:[#allocation5 + $0xe0] sm:$0xff] }
  0x17   :  { %185 = vmatpush.msrb.mxu0 %v83_v19  ;;  %226 = vmatpush.msrb.mxu2 %v75_v20  ;;  %v413_v35 = vld [vmem:[%s686_s3] sm:$0xff]  ;;  %v67_v38 = vld [vmem:[#allocation5 + $0x90] sm:$0xff]  ;;  %v78_v39 = vld [vmem:[#allocation5 + $0xe8] sm:$0xff] }
  0x18   :  { %245 = vmatpush.msrb.mxu3 %v86_v21  ;;  %205 = vmatpush.msrb.mxu1 %v84_v23  ;;  %v88_v37 = vld [vmem:[#allocation5 + $0x138] sm:$0xff]  ;;  %v57_v40 = vld [vmem:[#allocation5 + $0x40] sm:$0xff]  ;;  %v58_v42 = vld [vmem:[#allocation5 + $0x48] sm:$0xff] }
  0x19   :  { %186 = vmatpush.msrb.mxu0 %v73_v22  ;;  %227 = vmatpush.msrb.mxu2 %v65_v24  ;;  %v68_v41 = vld [vmem:[#allocation5 + $0x98] sm:$0xff]  ;;  %v294_v1 = vld [vmem:[%s685_s2 + $0x8] sm:$0x3] }
  0x1a   :  { %246 = vmatpush.msrb.mxu3 %v76_v25  ;;  %206 = vmatpush.msrb.mxu1 %v74_v27  ;;  %v293_v43 = vld [vmem:[%s685_s2] sm:$0xff]  ;;  %v305_v7 = vperm.slane %v294_v1, 0  ;;  %v306_v10 = vperm.slane %v294_v1, 1  ;;  %s567_s2 = smov [#allocation7]  }
  0x1b   :  { %187 = vmatpush.msrb.mxu0 %v63_v26  ;;  %228 = vmatpush.msrb.mxu2 %v55_v28  ;;  %v297_v44 = vperm.slane %v293_v43, 0  ;;  %v298_v45 = vperm.slane %v293_v43, 1  ;;  %v299_v50 = vperm.slane %v293_v43, 2  ;;  %v300_v52 = vperm.slane %v293_v43, 3  ;;  %s429_s30 = sshll.u32 %s567_s2, 4  ;;  %s430_s30 = int_to_ptr.vmem [resolvable:$true] %s429_s30 }
  0x1c   :  { %247 = vmatpush.msrb.mxu3 %v66_v29  ;;  %207 = vmatpush.msrb.mxu1 %v64_v31  ;;  %v301_v55 = vperm.slane %v293_v43, 4  ;;  %v302_v59 = vperm.slane %v293_v43, 5  ;;  %v303_v0 = vperm.slane %v293_v43, 6  ;;  %v304_v4 = vperm.slane %v293_v43, 7 }
  0x1d   :  { %188 = vmatpush.msrb.mxu0 %v53_v30  ;;  %448 = vmatmul.msk.f32.vlgmr.msrb.gmra.mxu2 %vm89_vm0, %v599_v14 }
  0x1e   :  { %248 = vmatpush.msrb.mxu3 %v56_v32  ;;  %446 = vmatmul.msk.f32.vlgmr.msrb.gmra.mxu0 %vm89_vm0, %v599_v14 }
  0x1f   :  { %208 = vmatpush.msrb.mxu1 %v54_v33  ;;  %449 = vmatmul.msk.f32.vlgmr.msrb.gmra.mxu3 %vm89_vm0, %v599_v14 }
  0x20   :  { %265 = vmatpush.msra.mxu0 %v87_v34  ;;  %447 = vmatmul.msk.f32.vlgmr.msrb.gmra.mxu1 %vm89_vm0, %v599_v14 }
  0x21   :  { %415 = vperm.xlu0 %460, %v413_v35   ;;  %285 = vmatpush.msra.mxu1 %v88_v37 }
  0x22   :  { %266 = vmatpush.msra.mxu0 %v77_v36 }
  0x23   :  { %286 = vmatpush.msra.mxu1 %v78_v39 }
  0x24   :  { %267 = vmatpush.msra.mxu0 %v67_v38 }
  0x25   :  { %287 = vmatpush.msra.mxu1 %v68_v41 }
  0x26   :  { %268 = vmatpush.msra.mxu0 %v57_v40 }
  0x27   :  { %450 = vmatmul.msk.f32.vlgmr.msra.gmra.mxu0 %vm89_vm0, %v599_v14  ;;  %288 = vmatpush.msra.mxu1 %v58_v42 }
  0x28   :  { %451 = vmatmul.msk.f32.vlgmr.msra.gmra.mxu1 %vm89_vm0, %v599_v14 }
  0x92   :  { %v110_v46 = vpop.f32.mrf.mxu0 }
  0x93   :  { %v130_v47 = vpop.f32.mrf.mxu1  ;;  %v627_v48 = vmul.f32 %v297_v44, %v110_v46 }
  0x94   :  { %v629_v49 = vmul.f32 %v298_v45, %v130_v47 }
  0x96   :  { %v150_v51 = vpop.f32.mrf.mxu2  ;;  %v327_v53 = vmax.f32 %v627_v48, %v629_v49 }
  0x97   :  { %v633_v54 = vmul.f32 %v299_v50, %v150_v51 }
  0x99   :  { %v328_v56 = vmax.f32 %v327_v53, %v633_v54  ;;  %v170_v57 = vpop.f32.mrf.mxu3 }
  0x9a   :  { %v636_v58 = vmul.f32 %v300_v52, %v170_v57 }
  0x9b   :  { %v190_v60 = vpop.f32.mrf.mxu0 }
  0x9c   :  { %v329_v61 = vmax.f32 %v328_v56, %v636_v58  ;;  %v639_v62 = vmul.f32 %v301_v55, %v190_v60 }
  0x9d   :  { %v210_v63 = vpop.f32.mrf.mxu1 }
  0x9e   :  { %v330_v2 = vmax.f32 %v329_v61, %v639_v62  ;;  %v645_v3 = vmul.f32 %v302_v59, %v210_v63 }
  0xa0   :  { %v331_v5 = vmax.f32 %v330_v2, %v645_v3  ;;  %v230_v6 = vpop.f32.mrf.mxu2 }
  0xa1   :  { %v648_v8 = vmul.f32 %v303_v0, %v230_v6 }
  0xa2   :  { %v250_v9 = vpop.f32.mrf.mxu3 }
  0xa3   :  { %v332_v11 = vmax.f32 %v331_v5, %v648_v8  ;;  %v651_v12 = vmul.f32 %v304_v4, %v250_v9 }
  0xa4   :  { %v270_v13 = vpop.f32.mrf.mxu0 }
  0xa5   :  { %v653_v14 = vmul.f32 %v305_v7, %v270_v13  ;;  %v333_v15 = vmax.f32 %v332_v11, %v651_v12  ;;  %v290_v16 = vpop.f32.mrf.mxu1  ;;  %v408_v13 = vlaneseq }
  0xa6   :  { %v656_v17 = vmul.f32 %v306_v10, %v290_v16 }
  0xa7   :  { %v334_v18 = vmax.f32 %v333_v15, %v653_v14 }
  0xa9   :  { %v335_v19 = vmax.f32 %v334_v18, %v656_v17 }
  0xab   :  { %v336_v20 = vsub.f32 %v627_v48, %v335_v19  ;;  %v343_v21 = vsub.f32 %v629_v49, %v335_v19  ;;  %v350_v22 = vsub.f32 %v633_v54, %v335_v19  ;;  %v357_v23 = vsub.f32 %v636_v58, %v335_v19 }
  0xac   :  { %v364_v24 = vsub.f32 %v639_v62, %v335_v19  ;;  %v371_v25 = vsub.f32 %v645_v3, %v335_v19  ;;  %v378_v31 = vsub.f32 %v648_v8, %v335_v19  ;;  %v385_v37 = vsub.f32 %v651_v12, %v335_v19 }
  0xad   :  { %v337_v26 = vmul.f32 10.0, %v336_v20  ;;  %v344_v27 = vmul.f32 10.0, %v343_v21  ;;  %v351_v28 = vmul.f32 10.0, %v350_v22  ;;  %v358_v29 = vmul.f32 10.0, %v357_v23  ;;  %v416_v23 = vpop.permute.xlu0 %415 }
  0xae   :  { %v365_v30 = vmul.f32 10.0, %v364_v24  ;;  %v372_v36 = vmul.f32 10.0, %v371_v25  ;;  %v379_v39 = vmul.f32 10.0, %v378_v31  ;;  %v392_v41 = vsub.f32 %v653_v14, %v335_v19 }
  0xaf   :  { %v338_v32 = vmul.f32 1.442695, %v337_v26  ;;  %v345_v33 = vmul.f32 1.442695, %v344_v27  ;;  %v352_v34 = vmul.f32 1.442695, %v351_v28  ;;  %v399_v44 = vsub.f32 %v656_v17, %v335_v19 }
  0xb0   :  { %v359_v35 = vmul.f32 1.442695, %v358_v29  ;;  %v366_v38 = vmul.f32 1.442695, %v365_v30  ;;  %v373_v40 = vmul.f32 1.442695, %v372_v36 }
  0xb1   :  { %461 = vpow2.f32 %v338_v32  ;;  %v386_v42 = vmul.f32 10.0, %v385_v37  ;;  %v380_v43 = vmul.f32 1.442695, %v379_v39  ;;  %v393_v50 = vmul.f32 10.0, %v392_v41 }
  0xb2   :  { %463 = vpow2.f32 %v345_v33  ;;  %v400_v57 = vmul.f32 10.0, %v399_v44  ;;  %v566_v29 = vmov 0.0  }
  0xb3   :  { %465 = vpow2.f32 %v352_v34  ;;  %v387_v53 = vmul.f32 1.442695, %v386_v42  ;;  %v394_v0 = vmul.f32 1.442695, %v393_v50 }
  0xb4   :  { %467 = vpow2.f32 %v359_v35  ;;  %v401_v5 = vmul.f32 1.442695, %v400_v57 }
  0xb5   :  { %469 = vpow2.f32 %v366_v38 }
  0xb6   :  { %471 = vpow2.f32 %v373_v40 }
  0xb7   :  { %v462_v45 = vpop.eup %461  ;;  %473 = vpow2.f32 %v380_v43 }
  0xb8   :  { %v464_v46 = vpop.eup %463  ;;  %v341_v47 = vmul.f32 %v462_v45, %v627_v48  ;;  %475 = vpow2.f32 %v387_v53 }
  0xb9   :  { %v466_v51 = vpop.eup %465  ;;  %v348_v52 = vmul.f32 %v464_v46, %v629_v49  ;;  %v347_v55 = vadd.f32 %v464_v46, %v462_v45  ;;  %477 = vpow2.f32 %v394_v0 }
  0xba   :  { %v468_v56 = vpop.eup %467  ;;  %v355_v60 = vmul.f32 %v466_v51, %v633_v54  ;;  %479 = vpow2.f32 %v401_v5 }
  0xbb   :  { %v349_v59 = vadd.f32 %v348_v52, %v341_v47  ;;  %v354_v61 = vadd.f32 %v466_v51, %v347_v55  ;;  %v470_v63 = vpop.eup %469  ;;  %v362_v2 = vmul.f32 %v468_v56, %v636_v58 }
  0xbc   :  { %v472_v4 = vpop.eup %471  ;;  %v369_v49 = vmul.f32 %v470_v63, %v639_v62  ;;  %v409_v62 = vand.u32 127, %v408_v13 }
  0xbd   :  { %v356_v1 = vadd.f32 %v355_v60, %v349_v59  ;;  %v361_v48 = vadd.f32 %v468_v56, %v354_v61  ;;  %v474_v9 = vpop.eup %473  ;;  %v376_v11 = vmul.f32 %v472_v4, %v645_v3 }
  0xbe   :  { %v476_v15 = vpop.eup %475  ;;  %v383_v58 = vmul.f32 %v474_v9, %v648_v8  ;;  %vm417_vm1 = vcmp.eq.s32.totalorder %v409_v62, %v416_v23 }
  0xbf   :  { %v363_v6 = vadd.f32 %v362_v2, %v356_v1  ;;  %v368_v7 = vadd.f32 %v470_v63, %v361_v48  ;;  %v478_v21 = vpop.eup %477  ;;  %v390_v22 = vmul.f32 %v476_v15, %v651_v12  ;;  %v452_v30 = vsel %vm417_vm1, 1.0, %v566_v29 }
  0xc0   :  { %v480_v25 = vpop.eup %479  ;;  %v397_v3 = vmul.f32 %v478_v21, %v653_v14  ;;  %v420_v32 = vmul.f32 0.01, %v452_v30 }
  0xc1   :  { %v370_v10 = vadd.f32 %v369_v49, %v363_v6  ;;  %v375_v54 = vadd.f32 %v472_v4, %v368_v7  ;;  %v404_v8 = vmul.f32 %v480_v25, %v656_v17 }
  0xc3   :  { %v377_v16 = vadd.f32 %v376_v11, %v370_v10  ;;  %v382_v18 = vadd.f32 %v474_v9, %v375_v54 }
  0xc5   :  { %v384_v19 = vadd.f32 %v383_v58, %v377_v16  ;;  %v389_v20 = vadd.f32 %v476_v15, %v382_v18 }
  0xc7   :  { %v396_v24 = vadd.f32 %v478_v21, %v389_v20  ;;  %v391_v26 = vadd.f32 %v390_v22, %v384_v19 }
  0xc9   :  { %v403_v27 = vadd.f32 %v480_v25, %v396_v24  ;;  %v398_v28 = vadd.f32 %v397_v3, %v391_v26 }
  0xcb   :  { %481 = vrcp.f32 %v403_v27  ;;  %v405_v31 = vadd.f32 %v404_v8, %v398_v28 }
  0xd1   :  { %v482_v33 = vpop.eup %481 }
  0xd2   :  { %v407_v34 = vmul.f32 %v482_v33, %v405_v31 }
  0xd4   :  { %v421_v12 = vsub.f32 %v407_v34, %v420_v32 }
  0xd6   :  { %v422_v35 = vmul.f32 20.0, %v421_v12 }
  0xd8   :  { %423 = vst [vmem:[#allocation7] sm:$0xff] %v422_v35 }
  0xd9   :  { %434 = dma.vmem_to_hbm [thread:$0]  %s430_s30, 128, %s432_s7, [#allocation4]  }
  0xda   :  { %559 = dma.done.wait [#allocation4], 128  }
  0xdb   :  { %560 = vsyncadd [#allocation4], 4294967168 }
  0xdc   :  { %439 = vsyncpa [#allocation3], 1 }
  0xdd   :  { %440 = vsyncpa [#allocation6], 1 }
  0xde   :  { %441 = vsyncpa [#allocation4], 1 }

</bundles_post_ra>
